<compile_context>
chip_gen: v5e
topology: v5e:2x2
jax: 0.10.0
libtpu: 0.0.40
codegen_flags: <defaults>
</compile_context>

<pallas_src>
import jax
import jax.numpy as jnp
from jax.experimental import pallas as pl
from jax.experimental.pallas import tpu as pltpu


def _pooler_kernel(x_ref, w_ref, b_ref, o_ref):
    """x_ref: [Bt, H] first-token rows; w_ref: [H, H] block-diag fused weight
    (stored [in, out]); b_ref: [1, H] fused bias; o_ref: [Bt, H] output."""
    x = x_ref[...]                                   # [Bt, H]
    w = w_ref[...]                                   # [H, H]
    # bf16 production path: weights were pre-cast once in the wrapper; feed the
    # MXU bf16 operands but keep accumulation / bias / tanh in f32.
    if x.dtype != w.dtype:
        x = x.astype(w.dtype)
    acc = jnp.dot(x, w, preferred_element_type=jnp.float32)    # [Bt, H] f32
    acc = acc + b_ref[...].astype(jnp.float32)                 # bias add, f32
    o_ref[...] = jnp.tanh(acc).astype(o_ref.dtype)             # tanh epilogue


def make_fused_pooler_weights(w_pos, b_pos, w_sem, b_sem, *, mxu_dtype=None):
    """One-time parameter preprocessing (run at weight-load time, NOT per call).

    w_pos: [P, P] (in, out), b_pos: [1, P], w_sem: [H-P, H-P] (in, out),
    b_sem: [1, H-P].  Returns (w_full [H, H], b_full [1, H]).
    """
    pos_dim = w_pos.shape[0]
    sem_dim = w_sem.shape[0]
    H = pos_dim + sem_dim
    assert w_pos.shape == (pos_dim, pos_dim)
    assert b_pos.shape == (1, pos_dim)
    assert w_sem.shape == (sem_dim, sem_dim)
    assert b_sem.shape == (1, sem_dim)

    w_full = jnp.zeros((H, H), dtype=w_pos.dtype)
    w_full = w_full.at[:pos_dim, :pos_dim].set(w_pos)
    w_full = w_full.at[pos_dim:, pos_dim:].set(w_sem)
    b_full = jnp.concatenate([b_pos, b_sem], axis=-1)          # [1, H]
    if mxu_dtype is not None:
        w_full = w_full.astype(mxu_dtype)   # halves weight DMA bytes as well
    return w_full, b_full


def _default_block_b(B):
    # Aim for >= 2 grid steps at production batch sizes so both v7x
    # TensorCores get work; keep the tile a multiple of 8 sublanes.
    if B <= 8:
        return B
    half = pl.cdiv(B, 2)
    return min(((half + 7) // 8) * 8, 256)


def bert_dim_pos_extrapol_pooler(hidden_states, w_full, b_full, *, block_b=None):
    """hidden_states: [B, S, H]; w_full/b_full from make_fused_pooler_weights.
    Returns pooled output [B, H]."""
    B, S, H = hidden_states.shape
    assert w_full.shape == (H, H)
    assert b_full.shape == (1, H)

    # First-token selection outside the kernel: the kernel then sees a dense
    # 2-D [B, H] operand (no 1-sublane padded seq dim, no relayout).  The
    # extra B*H bytes are negligible vs. the H*H weight traffic.
    first = hidden_states[:, 0, :]                              # [B, H]

    if block_b is None:
        block_b = _default_block_b(B)
    block_b = min(block_b, B)
    grid = (pl.cdiv(B, block_b),)

    itemsize = hidden_states.dtype.itemsize
    cost = pl.CostEstimate(
        flops=2 * B * H * H,
        transcendentals=B * H,
        bytes_accessed=(B * H * itemsize                      # x
                        + H * H * w_full.dtype.itemsize       # weight
                        + H * b_full.dtype.itemsize           # bias
                        + B * H * itemsize),                  # output
    )

    return pl.pallas_call(
        _pooler_kernel,
        out_shape=jax.ShapeDtypeStruct((B, H), hidden_states.dtype),
        grid=grid,
        in_specs=[
            # Batch-tiled first-token rows: (block_b, H), lane-dense.
            pl.BlockSpec((block_b, H), lambda i: (i, 0)),
            # Grid-invariant weight / bias: single-buffered (block index never
            # changes, so a second pipeline buffer would be dead VMEM).
            pl.BlockSpec((H, H), lambda i: (0, 0),
                         pipeline_mode=pl.Buffered(1)),
            pl.BlockSpec((1, H), lambda i: (0, 0),
                         pipeline_mode=pl.Buffered(1)),
        ],
        out_specs=pl.BlockSpec((block_b, H), lambda i: (i, 0)),
        compiler_params=pltpu.CompilerParams(
            dimension_semantics=("parallel",)),
        cost_estimate=cost,
    )(first, w_full, b_full)


def _reference(hidden_states, w_pos, b_pos, w_sem, b_sem, *, pos_dim):
    first = hidden_states[:, 0, :]
    pos_t = first[:, :pos_dim] @ w_pos + b_pos
    sem_t = first[:, pos_dim:] @ w_sem + b_sem
    return jnp.tanh(jnp.concatenate([pos_t, sem_t], axis=-1))


if __name__ == "__main__":
    # Small config consistent with the module:
    #   hidden_size = 32, position_dimensions = 8  ->  sem_dim = 24
    B, S, H = 2, 8, 32
    POS_DIM = 8
    SEM_DIM = H - POS_DIM

    key = jax.random.PRNGKey(0)
    k_x, k_wp, k_bp, k_ws, k_bs = jax.random.split(key, 5)

    hidden_states = jax.random.normal(k_x, (B, S, H), dtype=jnp.float32)

    # Deterministic PyTorch-Linear-style init: U(-1/sqrt(in), 1/sqrt(in)).
    # Stored as [in, out] (already transposed relative to nn.Linear.weight).
    bp_bound = 1.0 / (POS_DIM ** 0.5)
    bs_bound = 1.0 / (SEM_DIM ** 0.5)
    w_pos = jax.random.uniform(k_wp, (POS_DIM, POS_DIM), jnp.float32,
                               -bp_bound, bp_bound)
    b_pos = jax.random.uniform(k_bp, (1, POS_DIM), jnp.float32,
                               -bp_bound, bp_bound)
    w_sem = jax.random.uniform(k_ws, (SEM_DIM, SEM_DIM), jnp.float32,
                               -bs_bound, bs_bound)
    b_sem = jax.random.uniform(k_bs, (1, SEM_DIM), jnp.float32,
                               -bs_bound, bs_bound)

    ref = _reference(hidden_states, w_pos, b_pos, w_sem, b_sem,
                     pos_dim=POS_DIM)

    # --- f32 path (exact-tolerance check) ---
    w_full, b_full = make_fused_pooler_weights(w_pos, b_pos, w_sem, b_sem)
    out = bert_dim_pos_extrapol_pooler(hidden_states, w_full, b_full)
    out = jax.block_until_ready(out)
    assert out.shape == (B, H)
    assert jnp.allclose(out, ref, atol=1e-5, rtol=1e-5)

    # --- bf16 MXU-operand path (production default; looser tolerance) ---
    w_full_bf, b_full_bf = make_fused_pooler_weights(
        w_pos, b_pos, w_sem, b_sem, mxu_dtype=jnp.bfloat16)
    out_bf = bert_dim_pos_extrapol_pooler(hidden_states, w_full_bf, b_full_bf)
    out_bf = jax.block_until_ready(out_bf)
    assert out_bf.shape == (B, H)
    assert jnp.allclose(out_bf, ref, atol=2e-2, rtol=2e-2)

    print("KERNEL_OK")
</pallas_src>

<mosaic_0001>
module attributes {stable_mosaic.version = 11 : i64} {
  func.func @_pooler_kernel(%arg0: i32, %arg1: memref<2x32xf32, #tpu.memory_space<vmem>>, %arg2: memref<32x32xf32, #tpu.memory_space<vmem>>, %arg3: memref<1x32xf32, #tpu.memory_space<vmem>>, %arg4: memref<2x32xf32, #tpu.memory_space<vmem>>) attributes {dimension_semantics = [#tpu.dimension_semantics<parallel>], iteration_bounds = array<i64: 1>, scalar_prefetch = 0 : i64, scratch_operands = 0 : i64, tpu.core_type = #tpu.core_type<tc>, window_params = [{transform_indices = @transform_0, window_bounds = array<i64: 2, 32>}, {pipeline_mode = #tpu.pipeline_mode<synchronous>, transform_indices = @transform_1, window_bounds = array<i64: 32, 32>}, {pipeline_mode = #tpu.pipeline_mode<synchronous>, transform_indices = @transform_2, window_bounds = array<i64: 1, 32>}, {transform_indices = @transform_3, window_bounds = array<i64: 2, 32>}]} {
    %c0 = arith.constant 0 : index
    %c0_0 = arith.constant 0 : index
    %0 = vector.load %arg1[%c0, %c0_0] : memref<2x32xf32, #tpu.memory_space<vmem>>, vector<2x32xf32>
    %c0_1 = arith.constant 0 : index
    %c0_2 = arith.constant 0 : index
    %1 = vector.load %arg2[%c0_1, %c0_2] : memref<32x32xf32, #tpu.memory_space<vmem>>, vector<32x32xf32>
    %cst = arith.constant dense<0.000000e+00> : vector<2x32xf32>
    %2 = tpu.matmul %0, %1, %cst {dimension_numbers = #tpu.dot_dimension_numbers<[1], [0], [0], [1], [0, 0, 1, 1], [], []>} : vector<2x32xf32>, vector<32x32xf32>, vector<2x32xf32> -> vector<2x32xf32>
    %c0_3 = arith.constant 0 : index
    %c0_4 = arith.constant 0 : index
    %3 = vector.load %arg3[%c0_3, %c0_4] : memref<1x32xf32, #tpu.memory_space<vmem>>, vector<1x32xf32>
    %4 = vector.broadcast %3 : vector<1x32xf32> to vector<2x32xf32>
    %5 = arith.addf %2, %4 : vector<2x32xf32>
    %6 = math.tanh %5 : vector<2x32xf32>
    %c0_5 = arith.constant 0 : index
    %c0_6 = arith.constant 0 : index
    %7 = vector.load %arg4[%c0_5, %c0_6] : memref<2x32xf32, #tpu.memory_space<vmem>>, vector<2x32xf32>
    tpu.vector_store %arg4[%c0_5, %c0_6], %6 {strides = array<i32>} : memref<2x32xf32, #tpu.memory_space<vmem>>, vector<2x32xf32>,
    return
  }
  func.func @transform_0(%arg0: i32) -> (i32, i32) {
    %c0_i32 = arith.constant 0 : i32
    %c0_i32_0 = arith.constant 0 : i32
    return %arg0, %c0_i32 : i32, i32
  }
  func.func @transform_1(%arg0: i32) -> (i32, i32) {
    %c0_i32 = arith.constant 0 : i32
    %c0_i32_0 = arith.constant 0 : i32
    %c0_i32_1 = arith.constant 0 : i32
    return %c0_i32, %c0_i32_0 : i32, i32
  }
  func.func @transform_2(%arg0: i32) -> (i32, i32) {
    %c0_i32 = arith.constant 0 : i32
    %c0_i32_0 = arith.constant 0 : i32
    %c0_i32_1 = arith.constant 0 : i32
    return %c0_i32, %c0_i32_0 : i32, i32
  }
  func.func @transform_3(%arg0: i32) -> (i32, i32) {
    %c0_i32 = arith.constant 0 : i32
    %c0_i32_0 = arith.constant 0 : i32
    return %arg0, %c0_i32 : i32, i32
  }
}

</mosaic_0001>

<bundles_post_ra>
// kernel: tpu_custom_call.1
= control target key start
LH: loop header
LB: loop body
LE: loop exit
PB: predicated region body
PF: predicated region fallthrough
CT: control target
= control target key end

     0   :  { %8 = vsyncpa [#allocation3], 0  ;;  %s223_s0 = inlined_call_operand.hbm [shape: f32[2,32], index: 0, kind: input, shape index: {}]   ;;  %s224_s1 = inlined_call_operand.hbm [shape: f32[32,32], index: 1, kind: input, shape index: {}]   ;;  %s225_s2 = inlined_call_operand.vmem [shape: f32[1,32], index: 2, kind: input, shape index: {}]   ;;  %s226_s3 = inlined_call_operand.hbm [shape: f32[2,32], index: 3, kind: output, shape index: {}]  }
   0x1   :  { %9 = vsyncpa [#allocation6], 0 }
   0x2   :  { %10 = vsyncpa [#allocation4], 0  ;;  %s16_s14 = sshll.u32 %s223_s0, 4  ;;  %s186_s15 = smov [#allocation2]   ;;  %s17_s14 = int_to_ptr.hbm [resolvable:$true] %s16_s14 }
   0x3   :  { %s18_s16 = sshll.u32 %s186_s15, 4  ;;  %s26_s19 = sshll.u32 %s224_s1, 4  ;;  %s19_s16 = int_to_ptr.vmem [resolvable:$true] %s18_s16  ;;  %s27_s19 = int_to_ptr.hbm [resolvable:$true] %s26_s19 }
   0x4   :  { %21 = dma.hbm_to_vmem [thread:$0]  %s17_s14, 32, %s19_s16, [#allocation3]  }
   0x5   :  { %s187_s20 = smov [#allocation5]   ;;  %s188_s22 = smov 128  }
   0x6   :  { %s28_s21 = sshll.u32 %s187_s20, 4  ;;  %s189_s23 = smov 8   ;;  %s29_s21 = int_to_ptr.vmem [resolvable:$true] %s28_s21 }
   0x7   :  { %34 = dma.hbm_to_vmem [thread:$0]  %s27_s19, 512, %s29_s21, [#allocation6], %s188_s22, %s188_s22, %s189_s23  }
   0x8   :  { %180 = dma.done.wait [#allocation3], 32  }
   0x9   :  { %181 = vsyncadd [#allocation3], 4294967264 }
   0xa   :  { %182 = dma.done.wait [#allocation6], 512  }
   0xb   :  { %183 = vsyncadd [#allocation6], 4294966784  ;;  %v49_v0 = vld [vmem:[#allocation5 + $0x18] sm:$0xff]  ;;  %v48_v1 = vld [vmem:[#allocation5 + $0x10] sm:$0xff]  ;;  %vm54_vm0 = vcmask 261120   ;;  %s190_s24 = smov [#allocation7]  }
   0xc   :  { %70 = vmatpush.msra.mxu0 %v49_v0  ;;  %v47_v2 = vld [vmem:[#allocation5 + $0x8] sm:$0xff]  ;;  %v46_v3 = vld [vmem:[#allocation5] sm:$0xff]  ;;  %v45_v4 = vld [vmem:[#allocation2] sm:$0x3]  ;;  %s86_s25 = sshll.u32 %s190_s24, 4  ;;  %s88_s28 = sshll.u32 %s226_s3, 4  ;;  %s87_s25 = int_to_ptr.vmem [resolvable:$true] %s86_s25  ;;  %s89_s28 = int_to_ptr.hbm [resolvable:$true] %s88_s28 }
   0xd   :  { %v105_v5 = vld [vmem:[%s225_s2] ss:$0 sm:$0xff]  ;;  %vm79_vm1 = vcmask 254976  }
   0xe   :  { %71 = vmatpush.msra.mxu0 %v48_v1 }
  0x10   :  { %72 = vmatpush.msra.mxu0 %v47_v2 }
  0x12   :  { %73 = vmatpush.msra.mxu0 %v46_v3 }
  0x13   :  { %99 = vmatmul.msk.f32.vlgmr.msra.gmra.mxu0 %vm54_vm0, %v45_v4 }
  0x90   :  { %v75_v6 = vpop.f32.mrf.mxu0 }
  0x91   :  { %v76_v7 = vadd.f32 %v105_v5, %v75_v6 }
  0x93   :  { %106 = vtanh.f32 %v76_v7 }
  0x99   :  { %v107_v8 = vpop.eup %106 }
  0x9a   :  { %80 = vst.msk [vmem:[#allocation7] sm:$0x3] %vm79_vm1, %v107_v8 }
  0x9b   :  { %91 = dma.vmem_to_hbm [thread:$0]  %s87_s25, 32, %s89_s28, [#allocation4]  }
  0x9c   :  { %184 = dma.done.wait [#allocation4], 32  }
  0x9d   :  { %185 = vsyncadd [#allocation4], 4294967264 }
  0x9e   :  { %96 = vsyncpa [#allocation3], 1 }
  0x9f   :  { %97 = vsyncpa [#allocation6], 1 }
  0xa0   :  { %98 = vsyncpa [#allocation4], 1 }

</bundles_post_ra>
